<compile_context>
chip_gen: v7x
topology: tpu7x:2x2x1
jax: 0.10.0
libtpu: 0.0.40
codegen_flags: <defaults>
</compile_context>

<pallas_src>
import math
from dataclasses import dataclass
from functools import partial

import numpy as np
import jax
import jax.numpy as jnp
from jax.experimental import pallas as pl
from jax.experimental.pallas import tpu as pltpu

ACT_DTYPE = jnp.bfloat16     # activation / weight storage dtype (MXU inputs)
MAX_TILE_M = 512             # M-tile for the conv matmul grid


# ----------------------------------------------------------------------------------------------
# Pallas kernels
# ----------------------------------------------------------------------------------------------

def _mm_affine_kernel(x_ref, w_ref, s_ref, b_ref, o_ref, *, relu):
    """(bf16 x bf16 -> f32 acc) * scale + shift, optional ReLU, store bf16. No residual."""
    acc = jnp.dot(x_ref[...], w_ref[...], preferred_element_type=jnp.float32)
    y = acc * s_ref[...] + b_ref[...]
    if relu:
        y = jnp.maximum(y, 0.0)
    o_ref[...] = y.astype(o_ref.dtype)


def _mm_affine_res_kernel(x_ref, w_ref, s_ref, b_ref, r_ref, o_ref, *, relu):
    """Same as above but with a fused residual add (bottleneck shortcut) before the ReLU."""
    acc = jnp.dot(x_ref[...], w_ref[...], preferred_element_type=jnp.float32)
    y = acc * s_ref[...] + b_ref[...] + r_ref[...].astype(jnp.float32)
    if relu:
        y = jnp.maximum(y, 0.0)
    o_ref[...] = y.astype(o_ref.dtype)


def matmul_affine(xm, wm, scale, shift, residual=None, relu=True, tile_m=None,
                  out_dtype=ACT_DTYPE):
    """xm:(Mp,K) bf16 @ wm:(K,Cout) bf16, f32 epilogue (scale, shift, [residual], ReLU)."""
    Mp, K = xm.shape
    Cout = wm.shape[1]
    if tile_m is None:
        tile_m = Mp
    grid = (Mp // tile_m,)
    x_spec = pl.BlockSpec((tile_m, K), lambda i: (i, 0))
    w_spec = pl.BlockSpec((K, Cout), lambda i: (0, 0))
    v_spec = pl.BlockSpec((1, Cout), lambda i: (0, 0))
    o_spec = pl.BlockSpec((tile_m, Cout), lambda i: (i, 0))
    cp = pltpu.CompilerParams(dimension_semantics=("parallel",))
    if residual is None:
        return pl.pallas_call(
            partial(_mm_affine_kernel, relu=relu),
            out_shape=jax.ShapeDtypeStruct((Mp, Cout), out_dtype),
            grid=grid,
            in_specs=[x_spec, w_spec, v_spec, v_spec],
            out_specs=o_spec,
            compiler_params=cp,
        )(xm, wm, scale, shift)
    r_spec = pl.BlockSpec((tile_m, Cout), lambda i: (i, 0))
    return pl.pallas_call(
        partial(_mm_affine_res_kernel, relu=relu),
        out_shape=jax.ShapeDtypeStruct((Mp, Cout), out_dtype),
        grid=grid,
        in_specs=[x_spec, w_spec, v_spec, v_spec, r_spec],
        out_specs=o_spec,
        compiler_params=cp,
    )(xm, wm, scale, shift, residual)


def _pool_kernel(x_ref, o_ref, *, inv_hw):
    t = pl.program_id(0)

    @pl.when(t == 0)
    def _():
        o_ref[...] = jnp.zeros_like(o_ref)

    o_ref[...] += jnp.sum(x_ref[...].astype(jnp.float32), axis=1) * inv_hw


def global_avg_pool(x):
    """x: (N, HW, C) bf16 -> (N, C) f32, tiled over the HW reduction axis (accumulate in out)."""
    N, HW, C = x.shape
    t_hw = HW
    if HW > 1024:
        for cand in (1024, 512, 256, 128, 64, 32, 16, 8):
            if HW % cand == 0:
                t_hw = cand
                break
    return pl.pallas_call(
        partial(_pool_kernel, inv_hw=1.0 / HW),
        out_shape=jax.ShapeDtypeStruct((N, C), jnp.float32),
        grid=(HW // t_hw,),
        in_specs=[pl.BlockSpec((N, t_hw, C), lambda t: (0, t, 0))],
        out_specs=pl.BlockSpec((N, C), lambda t: (0, 0)),
        compiler_params=pltpu.CompilerParams(dimension_semantics=("arbitrary",)),
    )(x)


def _fc_kernel(x_ref, w_ref, b_ref, o_ref):
    o_ref[...] = jnp.dot(x_ref[...], w_ref[...],
                         preferred_element_type=jnp.float32) + b_ref[...]


def fc_head(pooled, w, b):
    """pooled:(N,C) f32, w:(C,nc) f32, b:(1,nc) f32 -> (N,nc) f32 (tiny dedicated kernel)."""
    N, C = pooled.shape
    nc = w.shape[1]
    Np = (max(N, 8) + 7) // 8 * 8
    xm = jnp.pad(pooled, ((0, Np - N), (0, 0)))
    out = pl.pallas_call(
        _fc_kernel,
        out_shape=jax.ShapeDtypeStruct((Np, nc), jnp.float32),
        grid=(1,),
        in_specs=[pl.BlockSpec((Np, C), lambda i: (0, 0)),
                  pl.BlockSpec((C, nc), lambda i: (0, 0)),
                  pl.BlockSpec((1, nc), lambda i: (0, 0))],
        out_specs=pl.BlockSpec((Np, nc), lambda i: (0, 0)),
    )(xm, w, b)
    return out[:N]


# ----------------------------------------------------------------------------------------------
# Conv wrapper glue (im2col only for k>1, M padding / tiling)
# ----------------------------------------------------------------------------------------------

def _round_up(v, m):
    return (v + m - 1) // m * m


def _pick_m_tiling(M):
    """Pad M and pick the M-tile: one big tile up to 1024, otherwise 512-row tiles."""
    if M <= 2 * MAX_TILE_M:
        Mp = _round_up(max(M, 8), 8)
        return Mp, Mp
    Mp = _round_up(M, MAX_TILE_M)
    return Mp, MAX_TILE_M


def _im2col(x, k, stride, pad):
    """x: (N,H,W,C) -> patches (N,Ho,Wo,k*k,C), same dtype as x (bf16)."""
    if pad:
        x = jnp.pad(x, ((0, 0), (pad, pad), (pad, pad), (0, 0)))
    N, Hp, Wp, C = x.shape
    Ho = (Hp - k) // stride + 1
    Wo = (Wp - k) // stride + 1
    cols = []
    for i in range(k):
        for j in range(k):
            cols.append(x[:, i:i + stride * (Ho - 1) + 1:stride,
                            j:j + stride * (Wo - 1) + 1:stride, :])
    return jnp.stack(cols, axis=3), Ho, Wo


def conv_norm_act(x, p, stride=1, relu=True, residual=None):
    """Conv2d (bias=False, weight pre-packed to matmul layout) + folded BN affine
    + optional residual + ReLU.  x: NHWC bf16."""
    k = p['k']
    wm = p['w']                                  # (k*k*Cin, Cout) bf16 (block-diag if grouped)
    Cout = wm.shape[1]
    N, H, W, Cin = x.shape

    if k == 1:
        # 1x1 conv: no patch extraction needed; stride handled by a strided slice.
        if stride > 1:
            x = x[:, ::stride, ::stride, :]
        _, Ho, Wo, _ = x.shape
        xm = x.reshape(N * Ho * Wo, Cin)
    else:
        pad = ((stride - 1) + (k - 1)) // 2      # timm default padding
        patches, Ho, Wo = _im2col(x, k, stride, pad)
        xm = patches.reshape(N * Ho * Wo, k * k * Cin)

    M = N * Ho * Wo
    Mp, tile_m = _pick_m_tiling(M)
    if Mp != M:
        xm = jnp.pad(xm, ((0, Mp - M), (0, 0)))

    res2d = None
    if residual is not None:
        res2d = residual.reshape(M, Cout)
        if Mp != M:
            res2d = jnp.pad(res2d, ((0, Mp - M), (0, 0)))

    out = matmul_affine(xm, wm, p['scale'], p['shift'], residual=res2d,
                        relu=relu, tile_m=tile_m)
    return out[:M].reshape(N, Ho, Wo, Cout)


# ----------------------------------------------------------------------------------------------
# RegNet architecture generation (faithful port of the reference config machinery)
# ----------------------------------------------------------------------------------------------

@dataclass
class RegNetCfg:
    depth: int = 8
    w0: int = 24
    wa: float = 24.0
    wm: float = 2.0
    group_size: int = 8
    bottle_ratio: float = 1.0
    se_ratio: float = 0.0          # 0.0 -> SE is Identity (as in default RegNetCfg)
    stem_width: int = 16


def quantize_float(f, q):
    return int(round(f / q) * q)


def adjust_widths_groups_comp(widths, bottle_ratios, groups):
    bottleneck_widths = [int(w * b) for w, b in zip(widths, bottle_ratios)]
    groups = [min(g, w_bot) for g, w_bot in zip(groups, bottleneck_widths)]
    bottleneck_widths = [quantize_float(w_bot, g) for w_bot, g in zip(bottleneck_widths, groups)]
    widths = [int(w_bot / b) for w_bot, b in zip(bottleneck_widths, bottle_ratios)]
    return widths, groups


def generate_regnet(width_slope, width_initial, width_mult, depth, group_size, quant=8):
    assert width_slope >= 0 and width_initial > 0 and width_mult > 1 and width_initial % quant == 0
    widths_cont = np.arange(depth) * width_slope + width_initial
    width_exps = np.round(np.log(widths_cont / width_initial) / np.log(width_mult))
    widths = np.round(np.divide(width_initial * np.power(width_mult, width_exps), quant)) * quant
    num_stages = len(np.unique(widths))
    groups = np.array([group_size for _ in range(num_stages)])
    return widths.astype(int).tolist(), num_stages, groups.astype(int).tolist()


def get_stage_args(cfg, default_stride=2, output_stride=32):
    widths, num_stages, stage_gs = generate_regnet(cfg.wa, cfg.w0, cfg.wm, cfg.depth, cfg.group_size)
    stage_widths, stage_depths = np.unique(widths, return_counts=True)
    stage_br = [cfg.bottle_ratio for _ in range(num_stages)]
    stage_strides, stage_dilations = [], []
    net_stride, dilation = 2, 1
    for _ in range(num_stages):
        if net_stride >= output_stride:
            dilation *= default_stride
            stride = 1
        else:
            stride = default_stride
            net_stride *= stride
        stage_strides.append(stride)
        stage_dilations.append(dilation)
    stage_widths, stage_gs = adjust_widths_groups_comp(
        [int(w) for w in stage_widths], stage_br, stage_gs)
    assert num_stages == 4, "RegNet reference asserts exactly 4 stages"
    return [dict(out_chs=int(w), stride=int(s), depth=int(d), group_size=int(g))
            for w, s, d, g in zip(stage_widths, stage_strides, stage_depths, stage_gs)]


# ----------------------------------------------------------------------------------------------
# Parameter init (deterministic; mirrors _init_weights + eval-mode BatchNorm folding).
# Weights are packed at init into matmul layout (k*k*Cin, Cout) bf16; grouped convs are expanded
# block-diagonally so they run as one lane-dense matmul.
# ----------------------------------------------------------------------------------------------

def conv_bn_params(key, in_ch, out_ch, k, groups=1, zero_gamma=False, eps=1e-5):
    fan_out = (k * k * out_ch) // groups
    std = math.sqrt(2.0 / fan_out)
    w = std * jax.random.normal(key, (out_ch, in_ch // groups, k, k), dtype=jnp.float32)
    if groups == 1:
        w_dense = w                                                  # (Cout, Cin, k, k)
    else:
        G, Cg, Cog = groups, in_ch // groups, out_ch // groups
        w_g = w.reshape(G, Cog, Cg, k, k)
        eye = jnp.eye(G, dtype=w.dtype)
        # block-diagonal expansion: W[g*Cog+o, h*Cg+c] = w_g[g,o,c] * (g == h)
        w_dense = jnp.einsum('gocij,gh->gohcij', w_g, eye).reshape(out_ch, in_ch, k, k)
    # (Cout, Cin, k, k) -> (k, k, Cin, Cout) -> (k*k*Cin, Cout); matches im2col (kk, Cin) flatten.
    wm = jnp.transpose(w_dense, (2, 3, 1, 0)).reshape(k * k * in_ch, out_ch).astype(ACT_DTYPE)
    gamma = jnp.zeros((out_ch,), jnp.float32) if zero_gamma else jnp.ones((out_ch,), jnp.float32)
    beta = jnp.zeros((out_ch,), jnp.float32)
    r_mean = jnp.zeros((out_ch,), jnp.float32)
    r_var = jnp.ones((out_ch,), jnp.float32)
    s = gamma / jnp.sqrt(r_var + eps)
    return dict(k=k, w=wm, scale=s.reshape(1, out_ch),
                shift=(beta - r_mean * s).reshape(1, out_ch))


def init_regnet_params(key, cfg, in_chans=3, num_classes=10):
    keys = iter(jax.random.split(key, 64))
    params = {'stem': conv_bn_params(next(keys), in_chans, cfg.stem_width, 3)}
    prev = cfg.stem_width
    stages = []
    for sa in get_stage_args(cfg):
        out_chs, stride, depth, gs = sa['out_chs'], sa['stride'], sa['depth'], sa['group_size']
        blocks = []
        for i in range(depth):
            bstride = stride if i == 0 else 1
            bin_chs = prev if i == 0 else out_chs
            bottleneck_chs = int(round(out_chs * cfg.bottle_ratio))
            groups = bottleneck_chs // gs
            blk = {
                'stride': bstride,
                'conv1': conv_bn_params(next(keys), bin_chs, bottleneck_chs, 1),
                'conv2': conv_bn_params(next(keys), bottleneck_chs, bottleneck_chs, 3, groups=groups),
                # zero_init_last=True zeroes conv3's BN gamma
                'conv3': conv_bn_params(next(keys), bottleneck_chs, out_chs, 1, zero_gamma=True),
                'down': (conv_bn_params(next(keys), bin_chs, out_chs, 1)
                         if (bin_chs != out_chs or bstride != 1) else None),
            }
            blocks.append(blk)
        stages.append(blocks)
        prev = out_chs
    params['stages'] = stages
    params['fc_w'] = 0.01 * jax.random.normal(next(keys), (prev, num_classes), dtype=jnp.float32)
    params['fc_b'] = jnp.zeros((1, num_classes), jnp.float32)
    return params


# ----------------------------------------------------------------------------------------------
# Forward pass
# ----------------------------------------------------------------------------------------------

def regnet_forward(params, x_nchw):
    x = jnp.transpose(x_nchw, (0, 2, 3, 1)).astype(ACT_DTYPE)   # NCHW -> NHWC, bf16 activations

    # stem: ConvNormAct(in_chans, stem_width, 3, stride=2) + ReLU
    x = conv_norm_act(x, params['stem'], stride=2, relu=True)

    # stages s1..s4 of Bottleneck blocks
    for blocks in params['stages']:
        for blk in blocks:
            shortcut = x
            y = conv_norm_act(x, blk['conv1'], stride=1, relu=True)
            y = conv_norm_act(y, blk['conv2'], stride=blk['stride'], relu=True)
            # se: Identity (se_ratio=0.0);  drop_path: Identity (drop_path_rate=0.0)
            if blk['down'] is None:
                res = shortcut
            else:
                res = conv_norm_act(shortcut, blk['down'], stride=blk['stride'], relu=False)
            # conv3 (no act) + BN, then residual add + act3 ReLU — fused in one Pallas kernel
            x = conv_norm_act(y, blk['conv3'], stride=1, relu=True, residual=res)

    # final_conv = Identity (num_features=0, linear_out=False, preact=False)

    # head: global avg pool (Pallas reduction) -> Linear (tiny Pallas matmul), drop_rate=0
    N, H, W, C = x.shape
    pooled = global_avg_pool(x.reshape(N, H * W, C))
    return fc_head(pooled, params['fc_w'], params['fc_b'])


# ----------------------------------------------------------------------------------------------

if __name__ == "__main__":
    key = jax.random.PRNGKey(0)
    pkey, xkey = jax.random.split(key)

    cfg = RegNetCfg()                      # small 4-stage RegNet: widths [24, 48, 96, 192]
    params = init_regnet_params(pkey, cfg, in_chans=3, num_classes=10)

    # PyTorch-style NCHW input
    x = jax.random.normal(xkey, (2, 3, 64, 64), dtype=jnp.float32)

    logits = regnet_forward(params, x)
    jax.block_until_ready(logits)

    assert logits.shape == (2, 10), logits.shape
    assert bool(jnp.all(jnp.isfinite(logits)))
    print("KERNEL_OK")
</pallas_src>

<mosaic_0001>
module attributes {stable_mosaic.version = 11 : i64} {
  func.func @_mm_affine_kernel(%arg0: i32, %arg1: memref<512x27xbf16, #tpu.memory_space<vmem>>, %arg2: memref<27x16xbf16, #tpu.memory_space<vmem>>, %arg3: memref<1x16xf32, #tpu.memory_space<vmem>>, %arg4: memref<1x16xf32, #tpu.memory_space<vmem>>, %arg5: memref<512x16xbf16, #tpu.memory_space<vmem>>) attributes {dimension_semantics = [#tpu.dimension_semantics<parallel>], iteration_bounds = array<i64: 4>, scalar_prefetch = 0 : i64, scratch_operands = 0 : i64, tpu.core_type = #tpu.core_type<tc>, window_params = [{transform_indices = @transform_0, window_bounds = array<i64: 512, 27>}, {pipeline_mode = #tpu.pipeline_mode<synchronous>, transform_indices = @transform_1, window_bounds = array<i64: 27, 16>}, {pipeline_mode = #tpu.pipeline_mode<synchronous>, transform_indices = @transform_2, window_bounds = array<i64: 1, 16>}, {pipeline_mode = #tpu.pipeline_mode<synchronous>, transform_indices = @transform_3, window_bounds = array<i64: 1, 16>}, {transform_indices = @transform_4, window_bounds = array<i64: 512, 16>}]} {
    %c0 = arith.constant 0 : index
    %c0_0 = arith.constant 0 : index
    %0 = vector.load %arg1[%c0, %c0_0] : memref<512x27xbf16, #tpu.memory_space<vmem>>, vector<512x27xbf16>
    %c0_1 = arith.constant 0 : index
    %c0_2 = arith.constant 0 : index
    %1 = vector.load %arg2[%c0_1, %c0_2] : memref<27x16xbf16, #tpu.memory_space<vmem>>, vector<27x16xbf16>
    %cst = arith.constant dense<0.000000e+00> : vector<512x16xf32>
    %2 = tpu.matmul %0, %1, %cst {dimension_numbers = #tpu.dot_dimension_numbers<[1], [0], [0], [1], [0, 0, 1, 1], [], []>} : vector<512x27xbf16>, vector<27x16xbf16>, vector<512x16xf32> -> vector<512x16xf32>
    %c0_3 = arith.constant 0 : index
    %c0_4 = arith.constant 0 : index
    %3 = vector.load %arg3[%c0_3, %c0_4] : memref<1x16xf32, #tpu.memory_space<vmem>>, vector<1x16xf32>
    %4 = vector.broadcast %3 : vector<1x16xf32> to vector<512x16xf32>
    %5 = arith.mulf %2, %4 : vector<512x16xf32>
    %c0_5 = arith.constant 0 : index
    %c0_6 = arith.constant 0 : index
    %6 = vector.load %arg4[%c0_5, %c0_6] : memref<1x16xf32, #tpu.memory_space<vmem>>, vector<1x16xf32>
    %7 = vector.broadcast %6 : vector<1x16xf32> to vector<512x16xf32>
    %8 = arith.addf %5, %7 : vector<512x16xf32>
    %cst_7 = arith.constant 0.000000e+00 : f32
    %9 = vector.broadcast %cst_7 : f32 to vector<512x16xf32>
    %10 = arith.maximumf %8, %9 : vector<512x16xf32>
    %11 = arith.truncf %10 : vector<512x16xf32> to vector<512x16xbf16>
    %c0_8 = arith.constant 0 : index
    %c0_9 = arith.constant 0 : index
    %12 = vector.load %arg5[%c0_8, %c0_9] : memref<512x16xbf16, #tpu.memory_space<vmem>>, vector<512x16xbf16>
    tpu.vector_store %arg5[%c0_8, %c0_9], %11 {strides = array<i32>} : memref<512x16xbf16, #tpu.memory_space<vmem>>, vector<512x16xbf16>,
    return
  }
  func.func @transform_0(%arg0: i32) -> (i32, i32) {
    %c0_i32 = arith.constant 0 : i32
    %c0_i32_0 = arith.constant 0 : i32
    return %arg0, %c0_i32 : i32, i32
  }
  func.func @transform_1(%arg0: i32) -> (i32, i32) {
    %c0_i32 = arith.constant 0 : i32
    %c0_i32_0 = arith.constant 0 : i32
    %c0_i32_1 = arith.constant 0 : i32
    return %c0_i32, %c0_i32_0 : i32, i32
  }
  func.func @transform_2(%arg0: i32) -> (i32, i32) {
    %c0_i32 = arith.constant 0 : i32
    %c0_i32_0 = arith.constant 0 : i32
    %c0_i32_1 = arith.constant 0 : i32
    return %c0_i32, %c0_i32_0 : i32, i32
  }
  func.func @transform_3(%arg0: i32) -> (i32, i32) {
    %c0_i32 = arith.constant 0 : i32
    %c0_i32_0 = arith.constant 0 : i32
    %c0_i32_1 = arith.constant 0 : i32
    return %c0_i32, %c0_i32_0 : i32, i32
  }
  func.func @transform_4(%arg0: i32) -> (i32, i32) {
    %c0_i32 = arith.constant 0 : i32
    %c0_i32_0 = arith.constant 0 : i32
    return %arg0, %c0_i32 : i32, i32
  }
}

</mosaic_0001>

<bundles_post_ra>
// kernel: tpu_custom_call.1
= control target key start
LH: loop header
LB: loop body
LE: loop exit
PB: predicated region body
PF: predicated region fallthrough
CT: control target
= control target key end

     0   :  { %s1807_s15 = smov 0   ;;  %s2171_s0 = inlined_call_operand.vmem [shape: bf16[2048,27], index: 0, kind: input, shape index: {}]   ;;  %s2172_s1 = inlined_call_operand.vmem [shape: bf16[27,16], index: 1, kind: input, shape index: {}]   ;;  %s2173_s2 = inlined_call_operand.vmem [shape: f32[1,16], index: 2, kind: input, shape index: {}]   ;;  %s2174_s3 = inlined_call_operand.vmem [shape: f32[1,16], index: 3, kind: input, shape index: {}]   ;;  %s2175_s4 = inlined_call_operand.vmem [shape: bf16[2048,16], index: 4, kind: output, shape index: {}]  }
   0x1 LB: > { %s1417_s16 = sadd.s32 4294967295, %s1779_s15   ;;  %p1421_p0 = scmp.ge.s32.totalorder %s1779_s15, 1  ;;  %s1779_s15 = sphi %s1807_s15, %s14_s15  }
   0x2   : > { %p163_p1 = scmp.lt.s32.totalorder %s1779_s15, 5 }
   0x4   : > { %p164_p2 = pnand %p1421_p0, %p163_p1 }
   0x5   : > { %v1739_v0 = vld [vmem:[%s2172_s1] sm:$0xff] (!%p164_p2)   ;;  %vm538_vm0 = vcmask (!%p164_p2), 1044480   ;;  %v1740_v1 = vld [vmem:[%s2172_s1 + $0x8] sm:$0x3f] (!%p164_p2)   ;;  %vm539_vm1 = vcmask (!%p164_p2), 1045504   ;;  %s1422_s21 = sshll.u32 (!%p164_p2), %s1417_s16, 6 }
   0x6   : > { %167 = sbr.rel (%p164_p2) target bundleno = 302 (0x12e), region = 36  ;;  %1658 = vmatprep.subr.bf16.mxu0 (!%p164_p2), %v1739_v0  ;;  %1726 = vmatprep.subr.bf16.mxu1 (!%p164_p2), %v1739_v0  ;;  %v1781_v2 = vmov (!%p164_p2), 65535   ;;  %p190_p3 = scmp.lt.s32.totalorder (!%p164_p2), %s1422_s21, 255  ;;  %vm441_vm2 = vcmask (!%p164_p2), 220160   ;;  %v1898_v38 = vld [vmem:[%s2173_s2] ss:$0 sm:$0xff] (!%p164_p2) }
   0x7   : > { %1659 = vmatpush3.bf16.msra.mxu0 (!%p164_p2), %v1739_v0  ;;  %1728 = vmatpush3.bf16.msra.mxu1 (!%p164_p2), %v1739_v0  ;;  %v540_v3 = vsel (!%p164_p2), %vm538_vm0, 4294967295, %v1781_v2  ;;  %v1903_v40 = vld [vmem:[%s2174_s3] ss:$0 sm:$0xff] (!%p164_p2)  ;;  %vm1296_vm3 = vcmask (!%p164_p2), 125952  }
   0x8   : > { %v541_v4 = vsel (!%p164_p2), %vm539_vm1, %v540_v3, 0 }
   0x9   : > { %v543_v5 = vand.u32 (!%p164_p2), %v1740_v1, %v541_v4 }
   0xb   : > { %1660 = vmatprep.subr.bf16.mxu0 (!%p164_p2), %v543_v5  ;;  %1727 = vmatprep.subr.bf16.mxu1 (!%p164_p2), %v543_v5 }
   0xc   : > { %1661 = vmatpush3.bf16.msra.mxu0 (!%p164_p2), %v543_v5  ;;  %1729 = vmatpush3.bf16.msra.mxu1 (!%p164_p2), %v543_v5 }
   0xd   : > { %s2177_s21 = smov (!%p190_p3, %s1422_s21), 255 }
   0xe   : > { %s1423_s22 = sshll.u32 %s2177_s21, 2 }
   0xf   : > { %s1829_s25 = scalar_lea.vmem %s2171_s0, %s1423_s22  ;;  %s1923_s6 = scalar_lea.vmem %s2175_s4, %s1423_s22 }
  0x10   : > { %v1741_v6 = vld [vmem:[%s1829_s25] sm:$0xff]   ;;  %v1743_v8 = vld [vmem:[%s1829_s25 + $0x8] sm:$0xff]   ;;  %v1745_v10 = vld [vmem:[%s1829_s25 + $0x10] sm:$0xff]  }
  0x11   : > { %v1742_v7 = vld [vmem:[%s1829_s25 + $0x80] sm:$0xff]   ;;  %1662 = vmatprep.mubr.msk.bf16.mxu0 %vm441_vm2, %v1741_v6  ;;  %v1744_v9 = vld [vmem:[%s1829_s25 + $0x88] sm:$0xff]   ;;  %v1746_v11 = vld [vmem:[%s1829_s25 + $0x90] sm:$0xff]  }
  0x12   : > { %1694 = vmatprep.mubr.msk.bf16.mxu1 %vm441_vm2, %v1742_v7  ;;  %1663 = vmatmul.mubr.msk.bf16.vlgmr.msra.gmra.mrb[0].mxu0 %vm441_vm2, %v1743_v8  ;;  %v1747_v12 = vld [vmem:[%s1829_s25 + $0x18] sm:$0xff]   ;;  %v1749_v14 = vld [vmem:[%s1829_s25 + $0x20] sm:$0xff]   ;;  %v1751_v16 = vld [vmem:[%s1829_s25 + $0x28] sm:$0xff]  }
  0x13   : > { %1695 = vmatmul.mubr.msk.bf16.vlgmr.msra.gmra.mrb[0].mxu1 %vm441_vm2, %v1744_v9  ;;  %1666 = vmatprep.mubr.msk.bf16.mxu0 %vm441_vm2, %v1745_v10  ;;  %v1748_v13 = vld [vmem:[%s1829_s25 + $0x98] sm:$0xff]   ;;  %v1750_v15 = vld [vmem:[%s1829_s25 + $0xa0] sm:$0xff]   ;;  %v1752_v17 = vld [vmem:[%s1829_s25 + $0xa8] sm:$0xff]  }
  0x14   : > { %1698 = vmatprep.mubr.msk.bf16.mxu1 %vm441_vm2, %v1746_v11  ;;  %v1753_v18 = vld [vmem:[%s1829_s25 + $0x30] sm:$0xff]   ;;  %v1755_v20 = vld [vmem:[%s1829_s25 + $0x38] sm:$0xff]   ;;  %v1757_v22 = vld [vmem:[%s1829_s25 + $0x40] sm:$0xff]  }
  0x15   : > { %v1754_v19 = vld [vmem:[%s1829_s25 + $0xb0] sm:$0xff]   ;;  %v1756_v21 = vld [vmem:[%s1829_s25 + $0xb8] sm:$0xff]   ;;  %v1758_v23 = vld [vmem:[%s1829_s25 + $0xc0] sm:$0xff]  }
  0x16   : > { %v1759_v24 = vld [vmem:[%s1829_s25 + $0x48] sm:$0xff]   ;;  %v1761_v26 = vld [vmem:[%s1829_s25 + $0x50] sm:$0xff]   ;;  %v1763_v28 = vld [vmem:[%s1829_s25 + $0x58] sm:$0xff]  }
  0x17   : > { %v1760_v25 = vld [vmem:[%s1829_s25 + $0xc8] sm:$0xff]   ;;  %v1762_v27 = vld [vmem:[%s1829_s25 + $0xd0] sm:$0xff]   ;;  %v1764_v29 = vld [vmem:[%s1829_s25 + $0xd8] sm:$0xff]  }
  0x18   : > { %v1765_v30 = vld [vmem:[%s1829_s25 + $0x60] sm:$0xff]   ;;  %v1767_v32 = vld [vmem:[%s1829_s25 + $0x68] sm:$0xff]   ;;  %v1769_v34 = vld [vmem:[%s1829_s25 + $0x70] sm:$0xff]  }
  0x19   : > { %v1766_v31 = vld [vmem:[%s1829_s25 + $0xe0] sm:$0xff]   ;;  %v1768_v33 = vld [vmem:[%s1829_s25 + $0xe8] sm:$0xff]   ;;  %v1770_v35 = vld [vmem:[%s1829_s25 + $0xf0] sm:$0xff]  }
  0x1a   : > { %1667 = vmatmul.mubr.msk.bf16.gmra.mrb[4].mxu0 %vm441_vm2, %v1747_v12  ;;  %v1771_v36 = vld [vmem:[%s1829_s25 + $0x78] sm:$0xff]  }
  0x1b   : > { %1699 = vmatmul.mubr.msk.bf16.gmra.mrb[4].mxu1 %vm441_vm2, %v1748_v13  ;;  %1670 = vmatprep.mubr.msk.bf16.mxu0 %vm441_vm2, %v1749_v14  ;;  %v1772_v37 = vld [vmem:[%s1829_s25 + $0xf8] sm:$0xff]  }
  0x1c   : > { %1702 = vmatprep.mubr.msk.bf16.mxu1 %vm441_vm2, %v1750_v15 }
  0x22   : > { %1671 = vmatmul.mubr.msk.bf16.gmra.mrb[8].mxu0 %vm441_vm2, %v1751_v16 }
  0x23   : > { %1703 = vmatmul.mubr.msk.bf16.gmra.mrb[8].mxu1 %vm441_vm2, %v1752_v17  ;;  %1674 = vmatprep.mubr.msk.bf16.mxu0 %vm441_vm2, %v1753_v18 }
  0x24   : > { %1706 = vmatprep.mubr.msk.bf16.mxu1 %vm441_vm2, %v1754_v19 }
  0x2a   : > { %1675 = vmatmul.mubr.msk.bf16.gmra.mrb[12].mxu0 %vm441_vm2, %v1755_v20 }
  0x2b   : > { %1707 = vmatmul.mubr.msk.bf16.gmra.mrb[12].mxu1 %vm441_vm2, %v1756_v21  ;;  %1678 = vmatprep.mubr.msk.bf16.mxu0 %vm441_vm2, %v1757_v22 }
  0x2c   : > { %1710 = vmatprep.mubr.msk.bf16.mxu1 %vm441_vm2, %v1758_v23 }
  0x32   : > { %1679 = vmatmul.mubr.msk.bf16.gmra.mrb[16].mxu0 %vm441_vm2, %v1759_v24 }
  0x33   : > { %1711 = vmatmul.mubr.msk.bf16.gmra.mrb[16].mxu1 %vm441_vm2, %v1760_v25  ;;  %1682 = vmatprep.mubr.msk.bf16.mxu0 %vm441_vm2, %v1761_v26 }
  0x34   : > { %1714 = vmatprep.mubr.msk.bf16.mxu1 %vm441_vm2, %v1762_v27 }
  0x3a   : > { %1683 = vmatmul.mubr.msk.bf16.gmra.mrb[20].mxu0 %vm441_vm2, %v1763_v28 }
  0x3b   : > { %1715 = vmatmul.mubr.msk.bf16.gmra.mrb[20].mxu1 %vm441_vm2, %v1764_v29  ;;  %1686 = vmatprep.mubr.msk.bf16.mxu0 %vm441_vm2, %v1765_v30 }
  0x3c   : > { %1718 = vmatprep.mubr.msk.bf16.mxu1 %vm441_vm2, %v1766_v31 }
  0x42   : > { %1687 = vmatmul.mubr.msk.bf16.gmra.mrb[24].mxu0 %vm441_vm2, %v1767_v32 }
  0x43   : > { %1719 = vmatmul.mubr.msk.bf16.gmra.mrb[24].mxu1 %vm441_vm2, %v1768_v33  ;;  %1690 = vmatprep.mubr.msk.bf16.mxu0 %vm441_vm2, %v1769_v34 }
  0x44   : > { %1722 = vmatprep.mubr.msk.bf16.mxu1 %vm441_vm2, %v1770_v35 }
  0x4a   : > { %1691 = vmatmul.mubr.msk.bf16.gmra.mrb[28].mxu0 %vm441_vm2, %v1771_v36 }
  0x4b   : > { %1723 = vmatmul.mubr.msk.bf16.gmra.mrb[28].mxu1 %vm441_vm2, %v1772_v37 }
  0xe5   : > { %v1664_v39 = vpop.f32.mrb[0].mxu0 }
  0xe6   : > { %v843_v41 = vmul.f32 %v1664_v39, %v1898_v38  ;;  %v1696_v42 = vpop.f32.mrb[0].mxu1  ;;  %v579_v43 = vpop.f32.mrb[1].mxu0 }
  0xe7   : > { %v875_v44 = vmul.f32 %v1696_v42, %v1898_v38  ;;  %v841_v45 = vmul.f32 %v1898_v38, %v579_v43  ;;  %v707_v46 = vpop.f32.mrb[1].mxu1  ;;  %v1665_v47 = vpop.f32.mrb[2].mxu0 }
  0xe8   : > { %v914_v48 = vadd.f32 %v1903_v40, %v843_v41  ;;  %v873_v49 = vmul.f32 %v1898_v38, %v707_v46  ;;  %v844_v50 = vmul.f32 %v1665_v47, %v1898_v38  ;;  %v1697_v51 = vpop.f32.mrb[2].mxu1  ;;  %v582_v52 = vpop.f32.mrb[3].mxu0 }
  0xe9   : > { %v946_v53 = vadd.f32 %v1903_v40, %v875_v44  ;;  %v912_v54 = vadd.f32 %v1903_v40, %v841_v45  ;;  %v876_v55 = vmul.f32 %v1697_v51, %v1898_v38  ;;  %v842_v56 = vmul.f32 %v1898_v38, %v582_v52  ;;  %v710_v57 = vpop.f32.mrb[3].mxu1 }
  0xea   : > { %v978_v58 = vmax.f32 %v914_v48, 0.0  ;;  %v944_v59 = vadd.f32 %v1903_v40, %v873_v49  ;;  %v915_v60 = vadd.f32 %v1903_v40, %v844_v50  ;;  %v874_v61 = vmul.f32 %v1898_v38, %v710_v57 }
  0xeb   : > { %v1010_v62 = vmax.f32 %v946_v53, 0.0  ;;  %v976_v63 = vmax.f32 %v912_v54, 0.0  ;;  %v947_v0 = vadd.f32 %v1903_v40, %v876_v55  ;;  %v913_v1 = vadd.f32 %v1903_v40, %v842_v56 }
  0xec   : > { %v1562_v2 = vpack.c.bf16 %v978_v58, %v978_v58  ;;  %v1008_v3 = vmax.f32 %v944_v59, 0.0  ;;  %v979_v4 = vmax.f32 %v915_v60, 0.0  ;;  %v945_v5 = vadd.f32 %v1903_v40, %v874_v61 }
  0xed   : > { %v1594_v6 = vpack.c.bf16 %v1010_v62, %v1010_v62  ;;  %v1560_v7 = vpack.c.bf16 %v976_v63, %v976_v63  ;;  %v1011_v8 = vmax.f32 %v947_v0, 0.0  ;;  %v977_v9 = vmax.f32 %v913_v1, 0.0  ;;  %v1668_v10 = vpop.f32.mrb[4].mxu0 }
  0xee   : > { %1299 = vst.msk [vmem:[%s1923_s6 + $0x8] sm:$0xf] %vm1296_vm3, %v1562_v2  ;;  %v1592_v11 = vpack.c.bf16 %v1008_v3, %v1008_v3  ;;  %v1563_v12 = vpack.c.bf16 %v979_v4, %v979_v4  ;;  %v1009_v13 = vmax.f32 %v945_v5, 0.0  ;;  %v847_v14 = vmul.f32 %v1668_v10, %v1898_v38  ;;  %v1700_v15 = vpop.f32.mrb[4].mxu1  ;;  %v595_v16 = vpop.f32.mrb[5].mxu0 }
  0xef   : > { %1331 = vst.msk [vmem:[%s1923_s6 + $0x88] sm:$0xf] %vm1296_vm3, %v1594_v6  ;;  %1297 = vst.msk [vmem:[%s1923_s6] sm:$0xf] %vm1296_vm3, %v1560_v7  ;;  %v1595_v17 = vpack.c.bf16 %v1011_v8, %v1011_v8  ;;  %v1561_v18 = vpack.c.bf16 %v977_v9, %v977_v9  ;;  %v879_v19 = vmul.f32 %v1700_v15, %v1898_v38  ;;  %v723_v21 = vpop.f32.mrb[5].mxu1  ;;  %v1669_v22 = vpop.f32.mrb[6].mxu0 }
  0xf0   : > { %v845_v20 = vmul.f32 %v1898_v38, %v595_v16  ;;  %1329 = vst.msk [vmem:[%s1923_s6 + $0x80] sm:$0xf] %vm1296_vm3, %v1592_v11  ;;  %1300 = vst.msk [vmem:[%s1923_s6 + $0xc] sm:$0xf] %vm1296_vm3, %v1563_v12  ;;  %v1593_v23 = vpack.c.bf16 %v1009_v13, %v1009_v13  ;;  %v918_v24 = vadd.f32 %v1903_v40, %v847_v14  ;;  %v1701_v27 = vpop.f32.mrb[6].mxu1  ;;  %v598_v28 = vpop.f32.mrb[7].mxu0 }
  0xf1   : > { %v877_v25 = vmul.f32 %v1898_v38, %v723_v21  ;;  %v848_v26 = vmul.f32 %v1669_v22, %v1898_v38  ;;  %1332 = vst.msk [vmem:[%s1923_s6 + $0x8c] sm:$0xf] %vm1296_vm3, %v1595_v17  ;;  %1298 = vst.msk [vmem:[%s1923_s6 + $0x4] sm:$0xf] %vm1296_vm3, %v1561_v18  ;;  %v950_v29 = vadd.f32 %v1903_v40, %v879_v19  ;;  %v726_v33 = vpop.f32.mrb[7].mxu1 }
  0xf2   : > { %v916_v30 = vadd.f32 %v1903_v40, %v845_v20  ;;  %v880_v31 = vmul.f32 %v1701_v27, %v1898_v38  ;;  %v846_v32 = vmul.f32 %v1898_v38, %v598_v28  ;;  %1330 = vst.msk [vmem:[%s1923_s6 + $0x84] sm:$0xf] %vm1296_vm3, %v1593_v23  ;;  %v982_v34 = vmax.f32 %v918_v24, 0.0 }
  0xf3   : > { %v948_v35 = vadd.f32 %v1903_v40, %v877_v25  ;;  %v919_v36 = vadd.f32 %v1903_v40, %v848_v26  ;;  %v878_v37 = vmul.f32 %v1898_v38, %v726_v33  ;;  %v1014_v39 = vmax.f32 %v950_v29, 0.0 }
  0xf4   : > { %v980_v41 = vmax.f32 %v916_v30, 0.0  ;;  %v951_v42 = vadd.f32 %v1903_v40, %v880_v31  ;;  %v917_v43 = vadd.f32 %v1903_v40, %v846_v32  ;;  %v1566_v44 = vpack.c.bf16 %v982_v34, %v982_v34 }
  0xf5   : > { %v1012_v45 = vmax.f32 %v948_v35, 0.0  ;;  %v983_v46 = vmax.f32 %v919_v36, 0.0  ;;  %v949_v47 = vadd.f32 %v1903_v40, %v878_v37  ;;  %v1598_v48 = vpack.c.bf16 %v1014_v39, %v1014_v39  ;;  %v1672_v52 = vpop.f32.mrb[8].mxu0 }
  0xf6   : > { %v1564_v49 = vpack.c.bf16 %v980_v41, %v980_v41  ;;  %v1015_v50 = vmax.f32 %v951_v42, 0.0  ;;  %v981_v51 = vmax.f32 %v917_v43, 0.0  ;;  %1303 = vst.msk [vmem:[%s1923_s6 + $0x18] sm:$0xf] %vm1296_vm3, %v1566_v44  ;;  %v851_v56 = vmul.f32 %v1672_v52, %v1898_v38  ;;  %v1704_v57 = vpop.f32.mrb[8].mxu1  ;;  %v611_v58 = vpop.f32.mrb[9].mxu0 }
  0xf7   : > { %v1596_v53 = vpack.c.bf16 %v1012_v45, %v1012_v45  ;;  %v1567_v54 = vpack.c.bf16 %v983_v46, %v983_v46  ;;  %v1013_v55 = vmax.f32 %v949_v47, 0.0  ;;  %1335 = vst.msk [vmem:[%s1923_s6 + $0x98] sm:$0xf] %vm1296_vm3, %v1598_v48  ;;  %v883_v61 = vmul.f32 %v1704_v57, %v1898_v38  ;;  %v739_v63 = vpop.f32.mrb[9].mxu1  ;;  %v1673_v0 = vpop.f32.mrb[10].mxu0 }
  0xf8   : > { %1301 = vst.msk [vmem:[%s1923_s6 + $0x10] sm:$0xf] %vm1296_vm3, %v1564_v49  ;;  %v1599_v59 = vpack.c.bf16 %v1015_v50, %v1015_v50  ;;  %v1565_v60 = vpack.c.bf16 %v981_v51, %v981_v51  ;;  %v849_v62 = vmul.f32 %v1898_v38, %v611_v58  ;;  %v922_v2 = vadd.f32 %v1903_v40, %v851_v56  ;;  %v1705_v5 = vpop.f32.mrb[10].mxu1  ;;  %v614_v6 = vpop.f32.mrb[11].mxu0 }
  0xf9   : > { %1333 = vst.msk [vmem:[%s1923_s6 + $0x90] sm:$0xf] %vm1296_vm3, %v1596_v53  ;;  %1304 = vst.msk [vmem:[%s1923_s6 + $0x1c] sm:$0xf] %vm1296_vm3, %v1567_v54  ;;  %v1597_v1 = vpack.c.bf16 %v1013_v55, %v1013_v55  ;;  %v881_v3 = vmul.f32 %v1898_v38, %v739_v63  ;;  %v852_v4 = vmul.f32 %v1673_v0, %v1898_v38  ;;  %v742_v11 = vpop.f32.mrb[11].mxu1 }
  0xfa   : > { %1336 = vst.msk [vmem:[%s1923_s6 + $0x9c] sm:$0xf] %vm1296_vm3, %v1599_v59  ;;  %1302 = vst.msk [vmem:[%s1923_s6 + $0x14] sm:$0xf] %vm1296_vm3, %v1565_v60  ;;  %v954_v7 = vadd.f32 %v1903_v40, %v883_v61  ;;  %v920_v8 = vadd.f32 %v1903_v40, %v849_v62  ;;  %v884_v9 = vmul.f32 %v1705_v5, %v1898_v38  ;;  %v986_v12 = vmax.f32 %v922_v2, 0.0 }
  0xfb   : > { %v850_v10 = vmul.f32 %v1898_v38, %v614_v6  ;;  %1334 = vst.msk [vmem:[%s1923_s6 + $0x94] sm:$0xf] %vm1296_vm3, %v1597_v1  ;;  %v952_v13 = vadd.f32 %v1903_v40, %v881_v3  ;;  %v923_v14 = vadd.f32 %v1903_v40, %v852_v4  ;;  %v882_v15 = vmul.f32 %v1898_v38, %v742_v11 }
  0xfc   : > { %v1018_v16 = vmax.f32 %v954_v7, 0.0  ;;  %v984_v17 = vmax.f32 %v920_v8, 0.0  ;;  %v955_v18 = vadd.f32 %v1903_v40, %v884_v9  ;;  %v1570_v20 = vpack.c.bf16 %v986_v12, %v986_v12 }
  0xfd   : > { %v921_v19 = vadd.f32 %v1903_v40, %v850_v10  ;;  %v1016_v21 = vmax.f32 %v952_v13, 0.0  ;;  %v987_v22 = vmax.f32 %v923_v14, 0.0  ;;  %v953_v23 = vadd.f32 %v1903_v40, %v882_v15  ;;  %v1676_v28 = vpop.f32.mrb[12].mxu0 }
  0xfe   : > { %v1602_v24 = vpack.c.bf16 %v1018_v16, %v1018_v16  ;;  %v1568_v25 = vpack.c.bf16 %v984_v17, %v984_v17  ;;  %v1019_v26 = vmax.f32 %v955_v18, 0.0  ;;  %1307 = vst.msk [vmem:[%s1923_s6 + $0x28] sm:$0xf] %vm1296_vm3, %v1570_v20  ;;  %v855_v32 = vmul.f32 %v1676_v28, %v1898_v38  ;;  %v1708_v33 = vpop.f32.mrb[12].mxu1  ;;  %v627_v34 = vpop.f32.mrb[13].mxu0 }
  0xff   : > { %v985_v27 = vmax.f32 %v921_v19, 0.0  ;;  %v1600_v29 = vpack.c.bf16 %v1016_v21, %v1016_v21  ;;  %v1571_v30 = vpack.c.bf16 %v987_v22, %v987_v22  ;;  %v1017_v31 = vmax.f32 %v953_v23, 0.0  ;;  %v755_v41 = vpop.f32.mrb[13].mxu1  ;;  %v1677_v42 = vpop.f32.mrb[14].mxu0 }
 0x100   : > { %1339 = vst.msk [vmem:[%s1923_s6 + $0xa8] sm:$0xf] %vm1296_vm3, %v1602_v24  ;;  %1305 = vst.msk [vmem:[%s1923_s6 + $0x20] sm:$0xf] %vm1296_vm3, %v1568_v25  ;;  %v1603_v35 = vpack.c.bf16 %v1019_v26, %v1019_v26  ;;  %v887_v37 = vmul.f32 %v1708_v33, %v1898_v38  ;;  %v853_v39 = vmul.f32 %v1898_v38, %v627_v34  ;;  %v1709_v47 = vpop.f32.mrb[14].mxu1  ;;  %v630_v48 = vpop.f32.mrb[15].mxu0 }
 0x101   : > { %v1569_v36 = vpack.c.bf16 %v985_v27, %v985_v27  ;;  %1337 = vst.msk [vmem:[%s1923_s6 + $0xa0] sm:$0xf] %vm1296_vm3, %v1600_v29  ;;  %1308 = vst.msk [vmem:[%s1923_s6 + $0x2c] sm:$0xf] %vm1296_vm3, %v1571_v30  ;;  %v1601_v43 = vpack.c.bf16 %v1017_v31, %v1017_v31  ;;  %v926_v44 = vadd.f32 %v1903_v40, %v855_v32  ;;  %v758_v53 = vpop.f32.mrb[15].mxu1 }
 0x102   : > { %v885_v45 = vmul.f32 %v1898_v38, %v755_v41  ;;  %v856_v46 = vmul.f32 %v1677_v42, %v1898_v38  ;;  %1340 = vst.msk [vmem:[%s1923_s6 + $0xac] sm:$0xf] %vm1296_vm3, %v1603_v35  ;;  %v958_v49 = vadd.f32 %v1903_v40, %v887_v37  ;;  %v924_v50 = vadd.f32 %v1903_v40, %v853_v39 }
 0x103   : > { %1306 = vst.msk [vmem:[%s1923_s6 + $0x24] sm:$0xf] %vm1296_vm3, %v1569_v36  ;;  %v888_v51 = vmul.f32 %v1709_v47, %v1898_v38  ;;  %v854_v52 = vmul.f32 %v1898_v38, %v630_v48  ;;  %1338 = vst.msk [vmem:[%s1923_s6 + $0xa4] sm:$0xf] %vm1296_vm3, %v1601_v43  ;;  %v990_v54 = vmax.f32 %v926_v44, 0.0  ;;  %v886_v57 = vmul.f32 %v1898_v38, %v758_v53 }
 0x104   : > { %v956_v55 = vadd.f32 %v1903_v40, %v885_v45  ;;  %v927_v56 = vadd.f32 %v1903_v40, %v856_v46  ;;  %v1022_v58 = vmax.f32 %v958_v49, 0.0  ;;  %v988_v59 = vmax.f32 %v924_v50, 0.0 }
 0x105   : > { %v959_v60 = vadd.f32 %v1903_v40, %v888_v51  ;;  %v925_v61 = vadd.f32 %v1903_v40, %v854_v52  ;;  %v1574_v62 = vpack.c.bf16 %v990_v54, %v990_v54  ;;  %v957_v1 = vadd.f32 %v1903_v40, %v886_v57  ;;  %v1680_v6 = vpop.f32.mrb[16].mxu0 }
 0x106   : > { %v1020_v63 = vmax.f32 %v956_v55, 0.0  ;;  %v991_v0 = vmax.f32 %v927_v56, 0.0  ;;  %v1606_v2 = vpack.c.bf16 %v1022_v58, %v1022_v58  ;;  %v1572_v3 = vpack.c.bf16 %v988_v59, %v988_v59  ;;  %v1712_v11 = vpop.f32.mrb[16].mxu1  ;;  %v643_v12 = vpop.f32.mrb[17].mxu0 }
 0x107   : > { %v1023_v4 = vmax.f32 %v959_v60, 0.0  ;;  %v989_v5 = vmax.f32 %v925_v61, 0.0  ;;  %1311 = vst.msk [vmem:[%s1923_s6 + $0x38] sm:$0xf] %vm1296_vm3, %v1574_v62  ;;  %v1021_v9 = vmax.f32 %v957_v1, 0.0  ;;  %v859_v10 = vmul.f32 %v1680_v6, %v1898_v38  ;;  %v771_v17 = vpop.f32.mrb[17].mxu1 }
 0x108   : > { %v1604_v7 = vpack.c.bf16 %v1020_v63, %v1020_v63  ;;  %v1575_v8 = vpack.c.bf16 %v991_v0, %v991_v0  ;;  %1343 = vst.msk [vmem:[%s1923_s6 + $0xb8] sm:$0xf] %vm1296_vm3, %v1606_v2  ;;  %1309 = vst.msk [vmem:[%s1923_s6 + $0x30] sm:$0xf] %vm1296_vm3, %v1572_v3  ;;  %v891_v15 = vmul.f32 %v1712_v11, %v1898_v38  ;;  %v1681_v18 = vpop.f32.mrb[18].mxu0  ;;  %v1713_v23 = vpop.f32.mrb[18].mxu1 }
 0x109   : > { %v1607_v13 = vpack.c.bf16 %v1023_v4, %v1023_v4  ;;  %v1573_v14 = vpack.c.bf16 %v989_v5, %v989_v5  ;;  %v857_v16 = vmul.f32 %v1898_v38, %v643_v12  ;;  %v1605_v19 = vpack.c.bf16 %v1021_v9, %v1021_v9  ;;  %v646_v24 = vpop.f32.mrb[19].mxu0  ;;  %v774_v29 = vpop.f32.mrb[19].mxu1 }
 0x10a   : > { %1341 = vst.msk [vmem:[%s1923_s6 + $0xb0] sm:$0xf] %vm1296_vm3, %v1604_v7  ;;  %1312 = vst.msk [vmem:[%s1923_s6 + $0x3c] sm:$0xf] %vm1296_vm3, %v1575_v8  ;;  %v930_v20 = vadd.f32 %v1903_v40, %v859_v10  ;;  %v889_v21 = vmul.f32 %v1898_v38, %v771_v17  ;;  %v860_v22 = vmul.f32 %v1681_v18, %v1898_v38 }
 0x10b   : > { %1344 = vst.msk [vmem:[%s1923_s6 + $0xbc] sm:$0xf] %vm1296_vm3, %v1607_v13  ;;  %1310 = vst.msk [vmem:[%s1923_s6 + $0x34] sm:$0xf] %vm1296_vm3, %v1573_v14  ;;  %v962_v25 = vadd.f32 %v1903_v40, %v891_v15  ;;  %v928_v26 = vadd.f32 %v1903_v40, %v857_v16  ;;  %v892_v27 = vmul.f32 %v1713_v23, %v1898_v38 }
 0x10c   : > { %v858_v28 = vmul.f32 %v1898_v38, %v646_v24  ;;  %1342 = vst.msk [vmem:[%s1923_s6 + $0xb4] sm:$0xf] %vm1296_vm3, %v1605_v19  ;;  %v994_v30 = vmax.f32 %v930_v20, 0.0  ;;  %v960_v31 = vadd.f32 %v1903_v40, %v889_v21  ;;  %v931_v32 = vadd.f32 %v1903_v40, %v860_v22 }
 0x10d   : > { %v890_v33 = vmul.f32 %v1898_v38, %v774_v29  ;;  %v1026_v34 = vmax.f32 %v962_v25, 0.0  ;;  %v992_v35 = vmax.f32 %v928_v26, 0.0  ;;  %v963_v36 = vadd.f32 %v1903_v40, %v892_v27  ;;  %v1684_v48 = vpop.f32.mrb[20].mxu0 }
 0x10e   : > { %v929_v37 = vadd.f32 %v1903_v40, %v858_v28  ;;  %v1578_v39 = vpack.c.bf16 %v994_v30, %v994_v30  ;;  %v1024_v41 = vmax.f32 %v960_v31, 0.0  ;;  %v995_v42 = vmax.f32 %v931_v32, 0.0  ;;  %v1716_v53 = vpop.f32.mrb[20].mxu1  ;;  %v659_v54 = vpop.f32.mrb[21].mxu0 }
 0x10f   : > { %v961_v43 = vadd.f32 %v1903_v40, %v890_v33  ;;  %v1610_v44 = vpack.c.bf16 %v1026_v34, %v1026_v34  ;;  %v1576_v45 = vpack.c.bf16 %v992_v35, %v992_v35  ;;  %v1027_v46 = vmax.f32 %v963_v36, 0.0  ;;  %v787_v59 = vpop.f32.mrb[21].mxu1  ;;  %v1685_v60 = vpop.f32.mrb[22].mxu0 }
 0x110   : > { %v993_v47 = vmax.f32 %v929_v37, 0.0  ;;  %1315 = vst.msk [vmem:[%s1923_s6 + $0x48] sm:$0xf] %vm1296_vm3, %v1578_v39  ;;  %v1608_v49 = vpack.c.bf16 %v1024_v41, %v1024_v41  ;;  %v1579_v50 = vpack.c.bf16 %v995_v42, %v995_v42  ;;  %v863_v52 = vmul.f32 %v1684_v48, %v1898_v38  ;;  %v1717_v1 = vpop.f32.mrb[22].mxu1  ;;  %v662_v2 = vpop.f32.mrb[23].mxu0 }
 0x111   : > { %v1025_v51 = vmax.f32 %v961_v43, 0.0  ;;  %1347 = vst.msk [vmem:[%s1923_s6 + $0xc8] sm:$0xf] %vm1296_vm3, %v1610_v44  ;;  %1313 = vst.msk [vmem:[%s1923_s6 + $0x40] sm:$0xf] %vm1296_vm3, %v1576_v45  ;;  %v1611_v55 = vpack.c.bf16 %v1027_v46, %v1027_v46  ;;  %v895_v57 = vmul.f32 %v1716_v53, %v1898_v38  ;;  %v861_v58 = vmul.f32 %v1898_v38, %v659_v54  ;;  %v790_v7 = vpop.f32.mrb[23].mxu1 }
 0x112   : > { %v1577_v56 = vpack.c.bf16 %v993_v47, %v993_v47  ;;  %1345 = vst.msk [vmem:[%s1923_s6 + $0xc0] sm:$0xf] %vm1296_vm3, %v1608_v49  ;;  %1316 = vst.msk [vmem:[%s1923_s6 + $0x4c] sm:$0xf] %vm1296_vm3, %v1579_v50  ;;  %v934_v62 = vadd.f32 %v1903_v40, %v863_v52  ;;  %v893_v63 = vmul.f32 %v1898_v38, %v787_v59 }
 0x113   : > { %v1609_v61 = vpack.c.bf16 %v1025_v51, %v1025_v51  ;;  %v864_v0 = vmul.f32 %v1685_v60, %v1898_v38  ;;  %1348 = vst.msk [vmem:[%s1923_s6 + $0xcc] sm:$0xf] %vm1296_vm3, %v1611_v55  ;;  %v966_v3 = vadd.f32 %v1903_v40, %v895_v57  ;;  %v932_v4 = vadd.f32 %v1903_v40, %v861_v58 }
 0x114   : > { %1314 = vst.msk [vmem:[%s1923_s6 + $0x44] sm:$0xf] %vm1296_vm3, %v1577_v56  ;;  %v896_v5 = vmul.f32 %v1717_v1, %v1898_v38  ;;  %v862_v6 = vmul.f32 %v1898_v38, %v662_v2  ;;  %v998_v8 = vmax.f32 %v934_v62, 0.0  ;;  %v964_v9 = vadd.f32 %v1903_v40, %v893_v63 }
 0x115   : > { %1346 = vst.msk [vmem:[%s1923_s6 + $0xc4] sm:$0xf] %vm1296_vm3, %v1609_v61  ;;  %v935_v10 = vadd.f32 %v1903_v40, %v864_v0  ;;  %v894_v11 = vmul.f32 %v1898_v38, %v790_v7  ;;  %v1030_v12 = vmax.f32 %v966_v3, 0.0  ;;  %v996_v13 = vmax.f32 %v932_v4, 0.0  ;;  %v1688_v24 = vpop.f32.mrb[24].mxu0 }
 0x116   : > { %v967_v14 = vadd.f32 %v1903_v40, %v896_v5  ;;  %v933_v15 = vadd.f32 %v1903_v40, %v862_v6  ;;  %v1582_v16 = vpack.c.bf16 %v998_v8, %v998_v8  ;;  %v1028_v17 = vmax.f32 %v964_v9, 0.0  ;;  %v1720_v29 = vpop.f32.mrb[24].mxu1  ;;  %v675_v30 = vpop.f32.mrb[25].mxu0 }
 0x117   : > { %v999_v18 = vmax.f32 %v935_v10, 0.0  ;;  %v965_v19 = vadd.f32 %v1903_v40, %v894_v11  ;;  %v1614_v20 = vpack.c.bf16 %v1030_v12, %v1030_v12  ;;  %v1580_v21 = vpack.c.bf16 %v996_v13, %v996_v13  ;;  %v803_v35 = vpop.f32.mrb[25].mxu1  ;;  %v1689_v36 = vpop.f32.mrb[26].mxu0 }
 0x118   : > { %v1031_v22 = vmax.f32 %v967_v14, 0.0  ;;  %v997_v23 = vmax.f32 %v933_v15, 0.0  ;;  %1319 = vst.msk [vmem:[%s1923_s6 + $0x58] sm:$0xf] %vm1296_vm3, %v1582_v16  ;;  %v1612_v25 = vpack.c.bf16 %v1028_v17, %v1028_v17  ;;  %v867_v28 = vmul.f32 %v1688_v24, %v1898_v38  ;;  %v1721_v43 = vpop.f32.mrb[26].mxu1  ;;  %v678_v44 = vpop.f32.mrb[27].mxu0 }
 0x119   : > { %v1583_v26 = vpack.c.bf16 %v999_v18, %v999_v18  ;;  %v1029_v27 = vmax.f32 %v965_v19, 0.0  ;;  %1351 = vst.msk [vmem:[%s1923_s6 + $0xd8] sm:$0xf] %vm1296_vm3, %v1614_v20  ;;  %1317 = vst.msk [vmem:[%s1923_s6 + $0x50] sm:$0xf] %vm1296_vm3, %v1580_v21  ;;  %v899_v33 = vmul.f32 %v1720_v29, %v1898_v38  ;;  %v865_v34 = vmul.f32 %v1898_v38, %v675_v30  ;;  %v806_v49 = vpop.f32.mrb[27].mxu1 }
 0x11a   : > { %v1615_v31 = vpack.c.bf16 %v1031_v22, %v1031_v22  ;;  %v1581_v32 = vpack.c.bf16 %v997_v23, %v997_v23  ;;  %1349 = vst.msk [vmem:[%s1923_s6 + $0xd0] sm:$0xf] %vm1296_vm3, %v1612_v25  ;;  %v938_v39 = vadd.f32 %v1903_v40, %v867_v28  ;;  %v897_v41 = vmul.f32 %v1898_v38, %v803_v35 }
 0x11b   : > { %1320 = vst.msk [vmem:[%s1923_s6 + $0x5c] sm:$0xf] %vm1296_vm3, %v1583_v26  ;;  %v1613_v37 = vpack.c.bf16 %v1029_v27, %v1029_v27  ;;  %v868_v42 = vmul.f32 %v1689_v36, %v1898_v38  ;;  %v970_v45 = vadd.f32 %v1903_v40, %v899_v33  ;;  %v936_v46 = vadd.f32 %v1903_v40, %v865_v34 }
 0x11c   : > { %1352 = vst.msk [vmem:[%s1923_s6 + $0xdc] sm:$0xf] %vm1296_vm3, %v1615_v31  ;;  %1318 = vst.msk [vmem:[%s1923_s6 + $0x54] sm:$0xf] %vm1296_vm3, %v1581_v32  ;;  %v900_v47 = vmul.f32 %v1721_v43, %v1898_v38  ;;  %v866_v48 = vmul.f32 %v1898_v38, %v678_v44  ;;  %v1002_v50 = vmax.f32 %v938_v39, 0.0  ;;  %v968_v51 = vadd.f32 %v1903_v40, %v897_v41 }
 0x11d   : > { %1350 = vst.msk [vmem:[%s1923_s6 + $0xd4] sm:$0xf] %vm1296_vm3, %v1613_v37  ;;  %v939_v52 = vadd.f32 %v1903_v40, %v868_v42  ;;  %v898_v53 = vmul.f32 %v1898_v38, %v806_v49  ;;  %v1034_v54 = vmax.f32 %v970_v45, 0.0  ;;  %v1000_v55 = vmax.f32 %v936_v46, 0.0  ;;  %v1692_v2 = vpop.f32.mrb[28].mxu0 }
 0x11e   : > { %v971_v56 = vadd.f32 %v1903_v40, %v900_v47  ;;  %v937_v57 = vadd.f32 %v1903_v40, %v866_v48  ;;  %v1586_v58 = vpack.c.bf16 %v1002_v50, %v1002_v50  ;;  %v1032_v59 = vmax.f32 %v968_v51, 0.0  ;;  %v1724_v7 = vpop.f32.mrb[28].mxu1  ;;  %v691_v8 = vpop.f32.mrb[29].mxu0 }
 0x11f   : > { %v1003_v60 = vmax.f32 %v939_v52, 0.0  ;;  %v969_v61 = vadd.f32 %v1903_v40, %v898_v53  ;;  %v1618_v62 = vpack.c.bf16 %v1034_v54, %v1034_v54  ;;  %v1584_v63 = vpack.c.bf16 %v1000_v55, %v1000_v55  ;;  %v819_v13 = vpop.f32.mrb[29].mxu1  ;;  %v1693_v14 = vpop.f32.mrb[30].mxu0 }
 0x120   : > { %v1035_v0 = vmax.f32 %v971_v56, 0.0  ;;  %v1001_v1 = vmax.f32 %v937_v57, 0.0  ;;  %1323 = vst.msk [vmem:[%s1923_s6 + $0x68] sm:$0xf] %vm1296_vm3, %v1586_v58  ;;  %v1616_v3 = vpack.c.bf16 %v1032_v59, %v1032_v59  ;;  %v871_v6 = vmul.f32 %v1692_v2, %v1898_v38  ;;  %v1725_v19 = vpop.f32.mrb[30].mxu1  ;;  %v694_v20 = vpop.f32.mrb[31].mxu0 }
 0x121   : > { %v1587_v4 = vpack.c.bf16 %v1003_v60, %v1003_v60  ;;  %v1033_v5 = vmax.f32 %v969_v61, 0.0  ;;  %1355 = vst.msk [vmem:[%s1923_s6 + $0xe8] sm:$0xf] %vm1296_vm3, %v1618_v62  ;;  %1321 = vst.msk [vmem:[%s1923_s6 + $0x60] sm:$0xf] %vm1296_vm3, %v1584_v63  ;;  %v903_v11 = vmul.f32 %v1724_v7, %v1898_v38  ;;  %v869_v12 = vmul.f32 %v1898_v38, %v691_v8  ;;  %v822_v25 = vpop.f32.mrb[31].mxu1 }
 0x122   : > { %v1619_v9 = vpack.c.bf16 %v1035_v0, %v1035_v0  ;;  %v1585_v10 = vpack.c.bf16 %v1001_v1, %v1001_v1  ;;  %1353 = vst.msk [vmem:[%s1923_s6 + $0xe0] sm:$0xf] %vm1296_vm3, %v1616_v3  ;;  %v942_v16 = vadd.f32 %v1903_v40, %v871_v6  ;;  %v901_v17 = vmul.f32 %v1898_v38, %v819_v13 }
 0x123   : > { %1324 = vst.msk [vmem:[%s1923_s6 + $0x6c] sm:$0xf] %vm1296_vm3, %v1587_v4  ;;  %v1617_v15 = vpack.c.bf16 %v1033_v5, %v1033_v5  ;;  %v872_v18 = vmul.f32 %v1693_v14, %v1898_v38  ;;  %v974_v21 = vadd.f32 %v1903_v40, %v903_v11  ;;  %v940_v22 = vadd.f32 %v1903_v40, %v869_v12 }
 0x124   : > { %1356 = vst.msk [vmem:[%s1923_s6 + $0xec] sm:$0xf] %vm1296_vm3, %v1619_v9  ;;  %1322 = vst.msk [vmem:[%s1923_s6 + $0x64] sm:$0xf] %vm1296_vm3, %v1585_v10  ;;  %v904_v23 = vmul.f32 %v1725_v19, %v1898_v38  ;;  %v870_v24 = vmul.f32 %v1898_v38, %v694_v20  ;;  %v1006_v26 = vmax.f32 %v942_v16, 0.0  ;;  %v972_v27 = vadd.f32 %v1903_v40, %v901_v17 }
 0x125   : > { %1354 = vst.msk [vmem:[%s1923_s6 + $0xe4] sm:$0xf] %vm1296_vm3, %v1617_v15  ;;  %v943_v28 = vadd.f32 %v1903_v40, %v872_v18  ;;  %v902_v29 = vmul.f32 %v1898_v38, %v822_v25  ;;  %v1038_v30 = vmax.f32 %v974_v21, 0.0  ;;  %v1004_v31 = vmax.f32 %v940_v22, 0.0 }
 0x126   : > { %v975_v32 = vadd.f32 %v1903_v40, %v904_v23  ;;  %v941_v33 = vadd.f32 %v1903_v40, %v870_v24  ;;  %v1590_v34 = vpack.c.bf16 %v1006_v26, %v1006_v26  ;;  %v1036_v35 = vmax.f32 %v972_v27, 0.0 }
 0x127   : > { %v1007_v36 = vmax.f32 %v943_v28, 0.0  ;;  %v973_v37 = vadd.f32 %v1903_v40, %v902_v29  ;;  %v1622_v39 = vpack.c.bf16 %v1038_v30, %v1038_v30  ;;  %v1588_v41 = vpack.c.bf16 %v1004_v31, %v1004_v31 }
 0x128   : > { %v1039_v38 = vmax.f32 %v975_v32, 0.0  ;;  %v1005_v42 = vmax.f32 %v941_v33, 0.0  ;;  %1327 = vst.msk [vmem:[%s1923_s6 + $0x78] sm:$0xf] %vm1296_vm3, %v1590_v34  ;;  %v1620_v43 = vpack.c.bf16 %v1036_v35, %v1036_v35 }
 0x129   : > { %v1591_v44 = vpack.c.bf16 %v1007_v36, %v1007_v36  ;;  %v1037_v45 = vmax.f32 %v973_v37, 0.0  ;;  %1359 = vst.msk [vmem:[%s1923_s6 + $0xf8] sm:$0xf] %vm1296_vm3, %v1622_v39  ;;  %1325 = vst.msk [vmem:[%s1923_s6 + $0x70] sm:$0xf] %vm1296_vm3, %v1588_v41 }
 0x12a   : > { %v1623_v46 = vpack.c.bf16 %v1039_v38, %v1039_v38  ;;  %v1589_v47 = vpack.c.bf16 %v1005_v42, %v1005_v42  ;;  %1357 = vst.msk [vmem:[%s1923_s6 + $0xf0] sm:$0xf] %vm1296_vm3, %v1620_v43 }
 0x12b   : > { %1328 = vst.msk [vmem:[%s1923_s6 + $0x7c] sm:$0xf] %vm1296_vm3, %v1591_v44  ;;  %v1621_v40 = vpack.c.bf16 %v1037_v45, %v1037_v45 }
 0x12c   : > { %1360 = vst.msk [vmem:[%s1923_s6 + $0xfc] sm:$0xf] %vm1296_vm3, %v1623_v46  ;;  %1326 = vst.msk [vmem:[%s1923_s6 + $0x74] sm:$0xf] %vm1296_vm3, %v1589_v47 }
 0x12d   : > { %1358 = vst.msk [vmem:[%s1923_s6 + $0xf4] sm:$0xf] %vm1296_vm3, %v1621_v40 }
 0x12e PF: > { %s14_s15 = sadd.s32 1, %s1779_s15  }
 0x12f   : > { %p11_p4 = scmp.ge.s32.totalorder %s14_s15, 6  }
 0x131   :  { %13 = sbr.rel (!%p11_p4) target bundleno = 1 (0x1), region = 66 }

</bundles_post_ra>
